<compile_context>
chip_gen: v5e
topology: v5e:2x2
jax: 0.10.0
libtpu: 0.0.40
codegen_flags: <defaults>
</compile_context>

<pallas_src>
import functools

import jax
import jax.numpy as jnp
from jax.experimental import pallas as pl
from jax.experimental.pallas import tpu as pltpu


def _constant_preprocess(x):
    # PyTorch 'constant' preprocess: identity on the score tensor.
    return x, None, None


def _sublane_multiple(dtype) -> int:
    # Minimum sublane granularity per dtype (f32: 8, bf16/f16: 16, 8-bit: 32).
    itemsize = jnp.dtype(dtype).itemsize
    return {4: 8, 2: 16, 1: 32}.get(itemsize, 8)


def _choose_block_rows(B, N, dtype, tb_max=512, vmem_budget_bytes=24 * 1024 * 1024):
    """Pick a batch tile so 2 inputs x 2 pipeline buffers stay under the VMEM budget."""
    itemsize = jnp.dtype(dtype).itemsize
    tb = min(B, tb_max)
    while tb > 8 and 2 * 2 * tb * N * itemsize > vmem_budget_bytes:
        tb = max(8, tb // 2)
    if tb >= B:
        return B  # single full-extent block along the batch dim (always legal)
    sub = _sublane_multiple(dtype)
    return max(sub, (tb // sub) * sub)


def _alignment_loss_kernel(d1_ref, d2_ref, partial_ref, *, inv_n, batch, block_rows):
    # [TB, N] tiles; all reduction math in f32 regardless of storage dtype.
    d1 = d1_ref[...].astype(jnp.float32)
    d2 = d2_ref[...].astype(jnp.float32)

    # std2 - std1 per row, fused into one elementwise expr + one lane reduction:
    #   (d2^2 - d2) - (d1^2 - d1) = (d2 - d1) * (d2 + d1 - 1)
    fused = (d2 - d1) * (d2 + d1 - 1.0)
    e = jnp.sum(fused, axis=1, keepdims=True) * inv_n            # [TB, 1]

    # Mask tail rows of the (possibly) ragged last block.
    row = (jax.lax.broadcasted_iota(jnp.int32, (block_rows, 1), 0)
           + pl.program_id(0) * block_rows)
    contrib = jnp.where(row < batch, e * e, 0.0)                  # [TB, 1]

    # Lane-dense per-block partial sum (scalar broadcast across 128 lanes).
    s = jnp.sum(contrib)
    partial_ref[...] = jnp.broadcast_to(s, (1, 128))


def alignment_loss(tea_dis1, tea_dis2, prefix="Teacher_Aignment", *, tb_max=512):
    """Pallas implementation of the teacher-alignment soft loss (constant preprocess)."""
    tea_dis1, _, _ = _constant_preprocess(tea_dis1)
    tea_dis2, _, _ = _constant_preprocess(tea_dis2)

    B, N = tea_dis1.shape
    assert tea_dis2.shape == (B, N)

    tb = _choose_block_rows(B, N, tea_dis1.dtype, tb_max=tb_max)
    num_blocks = pl.cdiv(B, tb)

    kernel = functools.partial(
        _alignment_loss_kernel, inv_n=1.0 / N, batch=B, block_rows=tb
    )

    partials = pl.pallas_call(
        kernel,
        out_shape=jax.ShapeDtypeStruct((num_blocks, 128), jnp.float32),
        grid=(num_blocks,),
        in_specs=[
            pl.BlockSpec((tb, N), lambda i: (i, 0)),
            pl.BlockSpec((tb, N), lambda i: (i, 0)),
        ],
        out_specs=pl.BlockSpec((1, 128), lambda i: (i, 0)),
        compiler_params=pltpu.CompilerParams(
            dimension_semantics=("parallel",),
        ),
    )(tea_dis1, tea_dis2)

    # All scale factors folded into one final multiply (mean over B, then /B again).
    loss = jnp.sum(partials[:, 0]) * (1.0 / (B * B))
    # No host-device sync here (no float()); caller can .item() outside the hot path.
    loss_record = {"soft_loss" + prefix: loss}
    return loss, loss_record


def _reference_loss(d1, d2):
    d1 = d1.astype(jnp.float32)
    d2 = d2.astype(jnp.float32)
    mean1 = d1.mean(axis=1)
    sqm1 = (d1 ** 2).mean(axis=1)
    std1 = sqm1 - mean1
    mean2 = d2.mean(axis=1)
    sqm2 = (d2 ** 2).mean(axis=1)
    std2 = sqm2 - mean2
    return ((std2 - std1) ** 2).mean() / d1.shape[0]


if __name__ == "__main__":
    key = jax.random.PRNGKey(0)
    k1, k2, k3, k4 = jax.random.split(key, 4)

    # Case 1: small aligned shapes (single-block path).
    B, N = 8, 128
    tea_dis1 = jax.random.normal(k1, (B, N), dtype=jnp.float32)
    tea_dis2 = jax.random.normal(k2, (B, N), dtype=jnp.float32)
    loss, loss_record = alignment_loss(tea_dis1, tea_dis2)
    jax.block_until_ready(loss)
    ref = _reference_loss(tea_dis1, tea_dis2)
    assert jnp.allclose(loss, ref, rtol=1e-4, atol=1e-7), (loss, ref)

    # Case 2: force tiling with a ragged last block (pipeline + masking path).
    B2, N2 = 20, 256
    e1 = jax.random.normal(k3, (B2, N2), dtype=jnp.float32)
    e2 = jax.random.normal(k4, (B2, N2), dtype=jnp.float32)
    loss2, _ = alignment_loss(e1, e2, tb_max=8)
    jax.block_until_ready(loss2)
    ref2 = _reference_loss(e1, e2)
    assert jnp.allclose(loss2, ref2, rtol=1e-4, atol=1e-7), (loss2, ref2)

    print("KERNEL_OK")
</pallas_src>

<mosaic_0001>
module attributes {stable_mosaic.version = 11 : i64} {
  func.func @_alignment_loss_kernel(%arg0: i32, %arg1: memref<8x128xf32, #tpu.memory_space<vmem>>, %arg2: memref<8x128xf32, #tpu.memory_space<vmem>>, %arg3: memref<1x128xf32, #tpu.memory_space<vmem>>) attributes {dimension_semantics = [#tpu.dimension_semantics<parallel>], iteration_bounds = array<i64: 1>, scalar_prefetch = 0 : i64, scratch_operands = 0 : i64, tpu.core_type = #tpu.core_type<tc>, window_params = [{transform_indices = @transform_0, window_bounds = array<i64: 8, 128>}, {transform_indices = @transform_1, window_bounds = array<i64: 8, 128>}, {transform_indices = @transform_2, window_bounds = array<i64: 1, 128>}]} {
    %c0 = arith.constant 0 : index
    %c0_0 = arith.constant 0 : index
    %0 = vector.load %arg1[%c0, %c0_0] : memref<8x128xf32, #tpu.memory_space<vmem>>, vector<8x128xf32>
    %c0_1 = arith.constant 0 : index
    %c0_2 = arith.constant 0 : index
    %1 = vector.load %arg2[%c0_1, %c0_2] : memref<8x128xf32, #tpu.memory_space<vmem>>, vector<8x128xf32>
    %2 = arith.subf %1, %0 : vector<8x128xf32>
    %3 = arith.addf %1, %0 : vector<8x128xf32>
    %cst = arith.constant 1.000000e+00 : f32
    %4 = vector.broadcast %cst : f32 to vector<8x128xf32>
    %5 = arith.subf %3, %4 : vector<8x128xf32>
    %6 = arith.mulf %2, %5 : vector<8x128xf32>
    %cst_3 = arith.constant dense<0.000000e+00> : vector<8xf32>
    %7 = vector.multi_reduction <add>, %6, %cst_3 [1] : vector<8x128xf32> to vector<8xf32>
    %8 = vector.shape_cast %7 : vector<8xf32> to vector<8x1xf32>
    %cst_4 = arith.constant 7.812500e-03 : f32
    %9 = vector.broadcast %cst_4 : f32 to vector<8x1xf32>
    %10 = arith.mulf %8, %9 : vector<8x1xf32>
    %11 = tpu.iota {dimensions = array<i32: 0>} : vector<8x1xi32>
    %c8_i32 = arith.constant 8 : i32
    %12 = arith.muli %arg0, %c8_i32 : i32
    %13 = vector.broadcast %12 : i32 to vector<8x1xi32>
    %14 = arith.addi %11, %13 : vector<8x1xi32>
    %c8_i32_5 = arith.constant 8 : i32
    %15 = vector.broadcast %c8_i32_5 : i32 to vector<8x1xi32>
    %16 = arith.cmpi slt, %14, %15 : vector<8x1xi32>
    %17 = arith.mulf %10, %10 : vector<8x1xf32>
    %cst_6 = arith.constant 0.000000e+00 : f32
    %18 = vector.broadcast %cst_6 : f32 to vector<8x1xf32>
    %19 = arith.select %16, %17, %18 : vector<8x1xi1>, vector<8x1xf32>
    %20 = vector.shape_cast %19 : vector<8x1xf32> to vector<1x8x1xf32>
    %cst_7 = arith.constant dense<0.000000e+00> : vector<1xf32>
    %21 = vector.multi_reduction <add>, %20, %cst_7 [1, 2] : vector<1x8x1xf32> to vector<1xf32>
    %22 = vector.shape_cast %21 : vector<1xf32> to vector<1x1x1xf32>
    %23 = vector.extract %22[0, 0, 0] : f32 from vector<1x1x1xf32>
    %24 = vector.broadcast %23 : f32 to vector<1x128xf32>
    %c0_8 = arith.constant 0 : index
    %c0_9 = arith.constant 0 : index
    %25 = vector.load %arg3[%c0_8, %c0_9] : memref<1x128xf32, #tpu.memory_space<vmem>>, vector<1x128xf32>
    tpu.vector_store %arg3[%c0_8, %c0_9], %24 {strides = array<i32>} : memref<1x128xf32, #tpu.memory_space<vmem>>, vector<1x128xf32>,
    return
  }
  func.func @transform_0(%arg0: i32) -> (i32, i32) {
    %c0_i32 = arith.constant 0 : i32
    %c0_i32_0 = arith.constant 0 : i32
    return %arg0, %c0_i32 : i32, i32
  }
  func.func @transform_1(%arg0: i32) -> (i32, i32) {
    %c0_i32 = arith.constant 0 : i32
    %c0_i32_0 = arith.constant 0 : i32
    return %arg0, %c0_i32 : i32, i32
  }
  func.func @transform_2(%arg0: i32) -> (i32, i32) {
    %c0_i32 = arith.constant 0 : i32
    %c0_i32_0 = arith.constant 0 : i32
    return %arg0, %c0_i32 : i32, i32
  }
}

</mosaic_0001>

<bundles_post_ra>
// kernel: tpu_custom_call.1
= control target key start
LH: loop header
LB: loop body
LE: loop exit
PB: predicated region body
PF: predicated region fallthrough
CT: control target
= control target key end

     0   :  { %7 = vsyncpa [#allocation3], 0  ;;  %s199_s0 = inlined_call_operand.hbm [shape: f32[8,128], index: 0, kind: input, shape index: {}]   ;;  %s200_s1 = inlined_call_operand.hbm [shape: f32[8,128], index: 1, kind: input, shape index: {}]   ;;  %s201_s2 = inlined_call_operand.hbm [shape: f32[1,128], index: 2, kind: output, shape index: {}]  }
   0x1   :  { %8 = vsyncpa [#allocation6], 0 }
   0x2   :  { %9 = vsyncpa [#allocation4], 0  ;;  %s15_s11 = sshll.u32 %s199_s0, 4  ;;  %s172_s12 = smov [#allocation2]   ;;  %s16_s11 = int_to_ptr.hbm [resolvable:$true] %s15_s11 }
   0x3   :  { %s17_s13 = sshll.u32 %s172_s12, 4  ;;  %s26_s16 = sshll.u32 %s200_s1, 4  ;;  %s18_s13 = int_to_ptr.vmem [resolvable:$true] %s17_s13  ;;  %s27_s16 = int_to_ptr.hbm [resolvable:$true] %s26_s16 }
   0x4   :  { %20 = dma.hbm_to_vmem [thread:$0]  %s16_s11, 128, %s18_s13, [#allocation3]  }
   0x5   :  { %s173_s17 = smov [#allocation5]  }
   0x6   :  { %s28_s18 = sshll.u32 %s173_s17, 4  ;;  %s29_s18 = int_to_ptr.vmem [resolvable:$true] %s28_s18 }
   0x7   :  { %31 = dma.hbm_to_vmem [thread:$0]  %s27_s16, 128, %s29_s18, [#allocation6]  }
   0x8   :  { %166 = dma.done.wait [#allocation3], 128  }
   0x9   :  { %167 = vsyncadd [#allocation3], 4294967168 }
   0xa   :  { %168 = dma.done.wait [#allocation6], 128  }
   0xb   :  { %169 = vsyncadd [#allocation6], 4294967168  ;;  %v40_v0 = vld [vmem:[#allocation2] sm:$0xff]  ;;  %v41_v1 = vld [vmem:[#allocation5] sm:$0xff]  ;;  %vm57_vm0 = vcmask 7168   ;;  %s174_s0 = smov [#allocation7]  }
   0xc   :  { %v42_v2 = vsub.f32 %v41_v1, %v40_v0  ;;  %v43_v3 = vadd.f32 %v41_v1, %v40_v0  ;;  %s75_s1 = sshll.u32 %s174_s0, 4  ;;  %s77_s21 = sshll.u32 %s201_s2, 4  ;;  %s76_s1 = int_to_ptr.vmem [resolvable:$true] %s75_s1  ;;  %s78_s21 = int_to_ptr.hbm [resolvable:$true] %s77_s21 }
   0xe   :  { %v88_v4 = vadd.f32 -1.0, %v43_v3 }
  0x10   :  { %v45_v5 = vmul.f32 %v88_v4, %v42_v2 }
  0x12   :  { %46 = vadd.xlane.f32.xlu0 %v45_v5 }
  0x85   :  { %v47_v6 = vpop.xlane.xlu0 %46 }
  0x86   :  { %v48_v7 = vmul.f32 0.0078125, %v47_v6 }
  0x88   :  { %v55_v8 = vmul.f32 %v48_v7, %v48_v7 }
  0x8a   :  { %v58_v9 = vsel %vm57_vm0, %v55_v8, 0.0 }
  0x8b   :  { %59 = vadd.xlane.f32.xlu0 %v58_v9 }
  0xfe   :  { %v60_v10 = vpop.xlane.xlu0 %59 }
  0xff   :  { %v61_v11 = vrot.slane %v60_v10, 4 }
 0x101   :  { %v62_v12 = vadd.f32 %v61_v11, %v60_v10 }
 0x103   :  { %v63_v13 = vrot.slane %v62_v12, 2 }
 0x105   :  { %v64_v14 = vadd.f32 %v63_v13, %v62_v12 }
 0x107   :  { %v65_v15 = vrot.slane %v64_v14, 1 }
 0x109   :  { %v66_v16 = vadd.f32 %v65_v15, %v64_v14 }
 0x10b   :  { %89 = vpush %v66_v16 }
 0x13c   :  { %s90_s22 = spop %89 }
 0x13d   :  { %v68_v17 = vstv %s90_s22 }
 0x13e   :  { %69 = vst [vmem:[#allocation7] sm:$0x1] %v68_v17 }
 0x13f   :  { %80 = dma.vmem_to_hbm [thread:$0]  %s76_s1, 16, %s78_s21, [#allocation4]  }
 0x140   :  { %170 = dma.done.wait [#allocation4], 16  }
 0x141   :  { %171 = vsyncadd [#allocation4], 4294967280 }
 0x142   :  { %85 = vsyncpa [#allocation3], 1 }
 0x143   :  { %86 = vsyncpa [#allocation6], 1 }
 0x144   :  { %87 = vsyncpa [#allocation4], 1 }

</bundles_post_ra>
